<compile_context>
chip_gen: v7x
topology: tpu7x:2x2x1
jax: 0.10.0
libtpu: 0.0.40
codegen_flags: <defaults>
</compile_context>

<pallas_src>
import functools

import jax
import jax.numpy as jnp
from jax.experimental import pallas as pl
from jax.experimental.pallas import tpu as pltpu


def _round_up(x: int, m: int) -> int:
    return ((x + m - 1) // m) * m


def _choose_tile_rows(n: int, c: int, itemsize: int,
                      max_tile_bytes: int = 4 << 20, max_rows: int = 1024) -> int:
    """Pick a batch-tile height: multiple of 8, VMEM-friendly when double-buffered."""
    rows_cap = max(8, (max_tile_bytes // max(1, c * itemsize)) // 8 * 8)
    tile = min(max_rows, rows_cap, _round_up(n, 8))
    return max(8, tile)


def _focal_loss_kernel(logits_ref, targets_ref, out_ref, acc_ref,
                       *, gamma: float, n_rows: int, tile_n: int):
    step = pl.program_id(0)

    @pl.when(step == 0)
    def _():
        acc_ref[...] = jnp.zeros_like(acc_ref)

    logits = logits_ref[...].astype(jnp.float32)             # (TILE_N, C)
    targets = targets_ref[...]                                # (TILE_N, 1) int32

    # Numerically-stable softmax pieces; row_max cancels in CE so it only shifts exp.
    row_max = jnp.max(logits, axis=-1, keepdims=True)         # (TILE_N, 1)
    shifted = logits - row_max                                 # (TILE_N, C)
    sumexp = jnp.sum(jnp.exp(shifted), axis=-1, keepdims=True)  # (TILE_N, 1)

    # Target-class pick via compare + select (no f32 one-hot materialization).
    class_ids = jax.lax.broadcasted_iota(jnp.int32, logits.shape, dimension=1)
    target_shifted = jnp.sum(jnp.where(class_ids == targets, shifted, 0.0),
                             axis=-1, keepdims=True)           # (TILE_N, 1)

    # Per-sample CE: logsumexp - target_logit == log(sumexp) - (target_logit - row_max)
    ce_per_row = jnp.log(sumexp) - target_shifted              # (TILE_N, 1)

    # Mask padded tail rows only when a tail exists (trace-time branch: the mask
    # is compiled out entirely when N divides the tile).
    if n_rows % tile_n != 0:
        row_ids = step * tile_n + jax.lax.broadcasted_iota(
            jnp.int32, (tile_n, 1), dimension=0)
        ce_per_row = jnp.where(row_ids < n_rows, ce_per_row, 0.0)

    acc_ref[...] += jnp.sum(ce_per_row, axis=0, keepdims=True)  # (1, 1)

    @pl.when(step == pl.num_programs(0) - 1)
    def _():
        ce = acc_ref[...] * jnp.float32(1.0 / n_rows)           # (1, 1) scalar CE (mean)
        pt = jnp.exp(-ce)
        one_minus = 1.0 - pt
        g = float(gamma)
        if g == 2.0:
            mod = one_minus * one_minus                         # explicit square, avoids pow()
        elif g == int(g) and g >= 0:
            mod = jnp.ones_like(one_minus)
            for _ in range(int(g)):
                mod = mod * one_minus
        else:
            mod = one_minus ** g
        out_ref[...] = (mod * ce).astype(out_ref.dtype)


def weighted_focal_loss(logits: jax.Array, targets: jax.Array,
                        gamma: float = 2.0, tile_rows: int | None = None) -> jax.Array:
    """logits: (N, C) float (any float dtype); targets: (N,) int class ids. Scalar f32."""
    logits = jnp.asarray(logits)
    n, c = logits.shape
    targets2d = jnp.asarray(targets).astype(jnp.int32).reshape(n, 1)

    if tile_rows is None:
        tile_n = _choose_tile_rows(n, c, logits.dtype.itemsize)
    else:
        tile_n = max(8, _round_up(int(tile_rows), 8))
        tile_n = min(tile_n, _round_up(n, 8))
    num_tiles = pl.cdiv(n, tile_n)

    kernel = functools.partial(_focal_loss_kernel, gamma=float(gamma),
                               n_rows=n, tile_n=tile_n)

    cost = pl.CostEstimate(
        flops=5 * n * c,
        transcendentals=n * c,                     # the per-element exp
        bytes_accessed=n * c * logits.dtype.itemsize + n * 4 + 4,
    )

    out = pl.pallas_call(
        kernel,
        out_shape=jax.ShapeDtypeStruct((1, 1), jnp.float32),
        grid_spec=pltpu.PrefetchScalarGridSpec(
            num_scalar_prefetch=0,
            grid=(num_tiles,),
            in_specs=[
                pl.BlockSpec((tile_n, c), lambda i: (i, 0)),   # logits tile
                pl.BlockSpec((tile_n, 1), lambda i: (i, 0)),   # targets tile
            ],
            out_specs=pl.BlockSpec((1, 1), lambda i: (0, 0)),  # resident scalar output
            scratch_shapes=[pltpu.VMEM((1, 1), jnp.float32)],  # running CE sum
        ),
        compiler_params=pltpu.CompilerParams(
            dimension_semantics=("arbitrary",),                # reduction axis
        ),
        cost_estimate=cost,
    )(logits, targets2d)
    return out[0, 0]


def _reference(logits, targets, gamma=2.0):
    # Pure-JAX reference matching PyTorch semantics.
    logits = logits.astype(jnp.float32)
    lse = jax.nn.logsumexp(logits, axis=-1)
    tgt = jnp.take_along_axis(logits, targets[:, None].astype(jnp.int32), axis=-1)[:, 0]
    ce = jnp.mean(lse - tgt)
    pt = jnp.exp(-ce)
    return ((1.0 - pt) ** gamma) * ce


if __name__ == "__main__":
    key = jax.random.PRNGKey(0)
    k1, k2 = jax.random.split(key)

    # Small shapes; N deliberately not a multiple of the tile to exercise the
    # multi-tile accumulation path and the padded-row masking.
    N, C = 27, 16
    logits = jax.random.normal(k1, (N, C), dtype=jnp.float32)
    targets = jax.random.randint(k2, (N,), 0, C, dtype=jnp.int32)

    ref = _reference(logits, targets, gamma=2.0)

    # Multi-tile path with a ragged tail (masking active).
    loss = jax.block_until_ready(weighted_focal_loss(logits, targets, gamma=2.0, tile_rows=8))
    assert jnp.allclose(loss, ref, rtol=1e-5, atol=1e-6), (loss, ref)

    # Single-tile (auto tile size) path; mask compiled out when N fits one tile? (N=27
    # rounds to a 32-row tile, so the mask path is still exercised here too).
    loss2 = jax.block_until_ready(weighted_focal_loss(logits, targets, gamma=2.0))
    assert jnp.allclose(loss2, ref, rtol=1e-5, atol=1e-6), (loss2, ref)

    # Evenly-divisible case: mask is compiled out at trace time.
    N2 = 32
    logits3 = jax.random.normal(k1, (N2, C), dtype=jnp.float32)
    targets3 = jax.random.randint(k2, (N2,), 0, C, dtype=jnp.int32)
    ref3 = _reference(logits3, targets3, gamma=2.0)
    loss3 = jax.block_until_ready(weighted_focal_loss(logits3, targets3, gamma=2.0, tile_rows=16))
    assert jnp.allclose(loss3, ref3, rtol=1e-5, atol=1e-6), (loss3, ref3)

    print("KERNEL_OK")
</pallas_src>

<mosaic_0001>
module attributes {stable_mosaic.version = 11 : i64} {
  func.func @_focal_loss_kernel(%arg0: i32, %arg1: memref<8x16xf32, #tpu.memory_space<vmem>>, %arg2: memref<8x1xi32, #tpu.memory_space<vmem>>, %arg3: memref<1x1xf32, #tpu.memory_space<vmem>>, %arg4: memref<1x1xf32, #tpu.memory_space<vmem>>) attributes {dimension_semantics = [#tpu.dimension_semantics<arbitrary>], iteration_bounds = array<i64: 4>, scalar_prefetch = 0 : i64, scratch_operands = 1 : i64, tpu.core_type = #tpu.core_type<tc>, window_params = [{transform_indices = @transform_0, window_bounds = array<i64: 8, 16>}, {transform_indices = @transform_1, window_bounds = array<i64: 8, 1>}, {pipeline_mode = #tpu.pipeline_mode<synchronous>, transform_indices = @transform_2, window_bounds = array<i64: 1, 1>}]} {
    %c0_i32 = arith.constant 0 : i32
    %0 = arith.cmpi eq, %arg0, %c0_i32 : i32
    %1 = arith.extui %0 : i1 to i32
    %c0_i32_0 = arith.constant 0 : i32
    %2 = arith.cmpi ne, %1, %c0_i32_0 : i32
    scf.if %2 {
      %cst_14 = arith.constant 0.000000e+00 : f32
      %37 = vector.broadcast %cst_14 : f32 to vector<1x1xf32>
      %c0_15 = arith.constant 0 : index
      %c0_16 = arith.constant 0 : index
      %38 = vector.load %arg4[%c0_15, %c0_16] : memref<1x1xf32, #tpu.memory_space<vmem>>, vector<1x1xf32>
      tpu.vector_store %arg4[%c0_15, %c0_16], %37 {strides = array<i32>} : memref<1x1xf32, #tpu.memory_space<vmem>>, vector<1x1xf32>,
    } else {
    }
    %c0 = arith.constant 0 : index
    %c0_1 = arith.constant 0 : index
    %3 = vector.load %arg1[%c0, %c0_1] : memref<8x16xf32, #tpu.memory_space<vmem>>, vector<8x16xf32>
    %c0_2 = arith.constant 0 : index
    %c0_3 = arith.constant 0 : index
    %4 = vector.load %arg2[%c0_2, %c0_3] : memref<8x1xi32, #tpu.memory_space<vmem>>, vector<8x1xi32>
    %cst = arith.constant dense<0xFF800000> : vector<8xf32>
    %5 = vector.multi_reduction <maximumf>, %3, %cst [1] : vector<8x16xf32> to vector<8xf32>
    %6 = vector.shape_cast %5 : vector<8xf32> to vector<8x1xf32>
    %7 = vector.broadcast %6 : vector<8x1xf32> to vector<8x16xf32>
    %8 = arith.subf %3, %7 : vector<8x16xf32>
    %9 = math.exp %8 : vector<8x16xf32>
    %cst_4 = arith.constant dense<0.000000e+00> : vector<8xf32>
    %10 = vector.multi_reduction <add>, %9, %cst_4 [1] : vector<8x16xf32> to vector<8xf32>
    %11 = vector.shape_cast %10 : vector<8xf32> to vector<8x1xf32>
    %12 = tpu.iota {dimensions = array<i32: 1>} : vector<8x16xi32>
    %13 = vector.broadcast %4 : vector<8x1xi32> to vector<8x16xi32>
    %14 = arith.cmpi eq, %12, %13 : vector<8x16xi32>
    %cst_5 = arith.constant 0.000000e+00 : f32
    %15 = vector.broadcast %cst_5 : f32 to vector<8x16xf32>
    %16 = arith.select %14, %8, %15 : vector<8x16xi1>, vector<8x16xf32>
    %cst_6 = arith.constant dense<0.000000e+00> : vector<8xf32>
    %17 = vector.multi_reduction <add>, %16, %cst_6 [1] : vector<8x16xf32> to vector<8xf32>
    %18 = vector.shape_cast %17 : vector<8xf32> to vector<8x1xf32>
    %19 = math.log %11 : vector<8x1xf32>
    %20 = arith.subf %19, %18 : vector<8x1xf32>
    %c8_i32 = arith.constant 8 : i32
    %21 = arith.muli %arg0, %c8_i32 : i32
    %22 = tpu.iota {dimensions = array<i32: 0>} : vector<8x1xi32>
    %23 = vector.broadcast %21 : i32 to vector<8x1xi32>
    %24 = arith.addi %23, %22 : vector<8x1xi32>
    %c27_i32 = arith.constant 27 : i32
    %25 = vector.broadcast %c27_i32 : i32 to vector<8x1xi32>
    %26 = arith.cmpi slt, %24, %25 : vector<8x1xi32>
    %cst_7 = arith.constant 0.000000e+00 : f32
    %27 = vector.broadcast %cst_7 : f32 to vector<8x1xf32>
    %28 = arith.select %26, %20, %27 : vector<8x1xi1>, vector<8x1xf32>
    %c0_8 = arith.constant 0 : index
    %c0_9 = arith.constant 0 : index
    %29 = vector.load %arg4[%c0_8, %c0_9] : memref<1x1xf32, #tpu.memory_space<vmem>>, vector<1x1xf32>
    %cst_10 = arith.constant dense<0.000000e+00> : vector<1xf32>
    %30 = vector.multi_reduction <add>, %28, %cst_10 [0] : vector<8x1xf32> to vector<1xf32>
    %31 = vector.shape_cast %30 : vector<1xf32> to vector<1x1xf32>
    %32 = arith.addf %29, %31 : vector<1x1xf32>
    %c0_11 = arith.constant 0 : index
    %c0_12 = arith.constant 0 : index
    %33 = vector.load %arg4[%c0_11, %c0_12] : memref<1x1xf32, #tpu.memory_space<vmem>>, vector<1x1xf32>
    tpu.vector_store %arg4[%c0_11, %c0_12], %32 {strides = array<i32>} : memref<1x1xf32, #tpu.memory_space<vmem>>, vector<1x1xf32>,
    %c3_i32 = arith.constant 3 : i32
    %34 = arith.cmpi eq, %arg0, %c3_i32 : i32
    %35 = arith.extui %34 : i1 to i32
    %c0_i32_13 = arith.constant 0 : i32
    %36 = arith.cmpi ne, %35, %c0_i32_13 : i32
    scf.if %36 {
      %c0_14 = arith.constant 0 : index
      %c0_15 = arith.constant 0 : index
      %37 = vector.load %arg4[%c0_14, %c0_15] : memref<1x1xf32, #tpu.memory_space<vmem>>, vector<1x1xf32>
      %cst_16 = arith.constant 0.0370370373 : f32
      %38 = vector.broadcast %cst_16 : f32 to vector<1x1xf32>
      %39 = arith.mulf %37, %38 : vector<1x1xf32>
      %cst_17 = arith.constant 0.000000e+00 : f32
      %40 = vector.broadcast %cst_17 : f32 to vector<1x1xf32>
      %41 = arith.subf %40, %39 : vector<1x1xf32>
      %42 = math.exp %41 : vector<1x1xf32>
      %cst_18 = arith.constant 1.000000e+00 : f32
      %43 = vector.broadcast %cst_18 : f32 to vector<1x1xf32>
      %44 = arith.subf %43, %42 : vector<1x1xf32>
      %45 = arith.mulf %44, %44 : vector<1x1xf32>
      %46 = arith.mulf %45, %39 : vector<1x1xf32>
      %c0_19 = arith.constant 0 : index
      %c0_20 = arith.constant 0 : index
      %47 = vector.load %arg3[%c0_19, %c0_20] : memref<1x1xf32, #tpu.memory_space<vmem>>, vector<1x1xf32>
      tpu.vector_store %arg3[%c0_19, %c0_20], %46 {strides = array<i32>} : memref<1x1xf32, #tpu.memory_space<vmem>>, vector<1x1xf32>,
    } else {
    }
    return
  }
  func.func @transform_0(%arg0: i32) -> (i32, i32) {
    %c0_i32 = arith.constant 0 : i32
    %c0_i32_0 = arith.constant 0 : i32
    return %arg0, %c0_i32 : i32, i32
  }
  func.func @transform_1(%arg0: i32) -> (i32, i32) {
    %c0_i32 = arith.constant 0 : i32
    %c0_i32_0 = arith.constant 0 : i32
    return %arg0, %c0_i32 : i32, i32
  }
  func.func @transform_2(%arg0: i32) -> (i32, i32) {
    %c0_i32 = arith.constant 0 : i32
    %c0_i32_0 = arith.constant 0 : i32
    %c0_i32_1 = arith.constant 0 : i32
    return %c0_i32, %c0_i32_0 : i32, i32
  }
}

</mosaic_0001>

<bundles_post_ra>
// kernel: tpu_custom_call.1
= control target key start
LH: loop header
LB: loop body
LE: loop exit
PB: predicated region body
PF: predicated region fallthrough
CT: control target
= control target key end

     0   :  { %7 = vsyncpa [#allocation4], 0  ;;  %s356_s9 = smov 0   ;;  %s406_s0 = inlined_call_operand.vmem [shape: f32[27,16], index: 0, kind: input, shape index: {}]   ;;  %s407_s1 = inlined_call_operand.vmem [shape: s32[27,1], index: 1, kind: input, shape index: {}]   ;;  %s408_s2 = inlined_call_operand.hbm [shape: f32[1,1], index: 2, kind: output, shape index: {}]  }
   0x1 LB: > { %s362_s10 = sadd.s32 4294967295, %s336_s9   ;;  %p266_p0 = scmp.ge.s32.totalorder %s336_s9, 1  ;;  %s336_s9 = sphi %s356_s9, %s13_s9  }
   0x2   : > { %p116_p1 = scmp.lt.s32.totalorder %s336_s9, 5 }
   0x4   : > { %p117_p2 = pnand %p266_p0, %p116_p1 }
   0x5   : > { %p136_p3 = scmp.lt.s32.totalorder (!%p117_p2), %s362_s10, 3  ;;  %p269_p4 = scmp.ne.s32.totalorder (!%p117_p2), %s362_s10, 0 }
   0x6   : > { %120 = sbr.rel (%p117_p2) target bundleno = 410 (0x19a), region = 28 }
   0xd   : > { %s137_s11 = scalar_select %p136_p3, %s362_s10, 3 }
   0xe   : > { %147 = sbr.rel (%p269_p4) target bundleno = 21 (0x15), region = 32  ;;  %vm148_vm0 = vcmask (!%p269_p4), 0   ;;  %v338_v0 = vmov (!%p269_p4), 0.0  }
   0xf   : > { %s267_s12 = sshll.u32 %s137_s11, 3  ;;  %149 = vst.msk [vmem:[#allocation2] sm:$0x1] (!%p269_p4), %vm148_vm0, %v338_v0 }
  0x10   : > { %s139_s15 = scalar_lea.vmem %s406_s0, %s267_s12  ;;  %s143_s18 = scalar_lea.vmem %s407_s1, %s267_s12 }
  0x15 PF: > { %v150_v1 = vld [vmem:[%s139_s15] sm:$0xff]  ;;  %vm152_vm1 = vcmask 130048   ;;  %v339_v3 = vmov 0   ;;  %v162_v8 = vlaneseq  ;;  %s270_s19 = sshll.u32 %s362_s10, 3  ;;  %vm190_vm4 = vcmask 0   ;;  %p271_p5 = scmp.ne.s32.totalorder %s362_s10, 3 }
  0x16   : > { %v153_v2 = vsel %vm152_vm1, %v150_v1, -inf  ;;  %293 = vset.pattern.permute.xlu0 %v339_v3  ;;  %v151_v4 = vld [vmem:[%s143_s18] sm:$0xff]  ;;  %v178_v17 = vstv %s270_s19 }
  0x17   : > { %154 = vmax.xlane.f32.xlu0 %v153_v2  ;;  %v163_v9 = vand.u32 127, %v162_v8  ;;  %v177_v16 = vshrl.u32 %v162_v8, 7  ;;  %v182_v29 = vld [vmem:[#allocation2] sm:$0x1] }
  0x19   : > { %v179_v18 = vadd.s32 %v178_v17, %v177_v16 }
  0x1b   : > { %vm180_vm3 = vcmp.lt.s32.totalorder %v179_v18, 27 }
  0x2d   : > { %165 = vperm.xlu0 %293, %v151_v4  }
  0xa4   : > { %v155_v5 = vpop.xlane.xlu0 %154 }
  0xa5   : > { %v156_v6 = vsub.f32 %v150_v1, %v155_v5 }
  0xa7   : > { %v157_v7 = vmul.f32 1.442695, %v156_v6 }
  0xa9   : > { %294 = vpow2.f32 %v157_v7 }
  0xac   : > { %v166_v10 = vpop.permute.xlu0 %165 }
  0xad   : > { %vm167_vm2 = vcmp.eq.s32.totalorder %v163_v9, %v166_v10 }
  0xae   : > { %v168_v13 = vsel %vm167_vm2, %v156_v6, 0.0 }
  0xaf   : > { %v169_v14 = vsel %vm152_vm1, %v168_v13, 0.0 }
  0xb3   : > { %v295_v11 = vpop.eup %294 }
  0xb4   : > { %v159_v12 = vsel %vm152_vm1, %v295_v11, 0.0 }
  0xb5   : > { %160 = vadd.xlane.f32.xlu1 %v159_v12 }
  0xb9   : > { %170 = vadd.xlane.f32.xlu1 %v169_v14 }
 0x142   : > { %v161_v15 = vpop.xlane.xlu1 %160 }
 0x143   : > { %296 = vlog2.f32 %v161_v15 }
 0x146   : > { %v171_v21 = vpop.xlane.xlu1 %170 }
 0x14d   : > { %v297_v19 = vpop.eup %296 }
 0x14e   : > { %v173_v20 = vmul.f32 0.6931472, %v297_v19 }
 0x150   : > { %v174_v22 = vsub.f32 %v173_v20, %v171_v21 }
 0x152   : > { %v181_v23 = vsel %vm180_vm3, %v174_v22, 0.0 }
 0x153   : > { %v183_v24 = vrot.slane %v181_v23, 4 }
 0x155   : > { %v184_v25 = vadd.f32 %v183_v24, %v181_v23 }
 0x157   : > { %v185_v26 = vrot.slane %v184_v25, 2 }
 0x159   : > { %v186_v27 = vadd.f32 %v185_v26, %v184_v25 }
 0x15b   : > { %v187_v28 = vrot.slane %v186_v27, 1  ;;  %195 = sbr.rel (%p271_p5) target bundleno = 385 (0x181), region = 36 }
 0x15d   : > { %v188_v30 = vadd.f32 %v187_v28, %v186_v27 }
 0x15f   : > { %v189_v31 = vadd.f32 %v188_v30, %v182_v29 }
 0x161   : > { %191 = vst.msk [vmem:[#allocation2] sm:$0x1] %vm190_vm4, %v189_v31 }
 0x168   : > { %v196_v32 = vld [vmem:[#allocation2] sm:$0x1] }
 0x169   : > { %v197_v33 = vmul.f32 0.037037037, %v196_v32 }
 0x16b   : > { %v198_v34 = vsub.f32 0.0, %v197_v33 }
 0x16d   : > { %v199_v35 = vmul.f32 1.442695, %v198_v34 }
 0x16f   : > { %298 = vpow2.f32 %v199_v35 }
 0x179   : > { %v299_v36 = vpop.eup %298 }
 0x17a   : > { %v201_v37 = vsub.f32 1.0, %v299_v36 }
 0x17c   : > { %v202_v38 = vmul.f32 %v201_v37, %v201_v37 }
 0x17e   : > { %v203_v39 = vmul.f32 %v202_v38, %v197_v33 }
 0x180   : > { %204 = vst.msk [vmem:[#allocation3] sm:$0x1] %vm190_vm4, %v203_v39 }
 0x181 PF: > { %p280_p6 = scmp.eq.s32.totalorder %s362_s10, 3  ;;  %s340_s20 = smov [#allocation3]  }
 0x182   : > { %s212_s21 = sshll.u32 %s340_s20, 4  ;;  %s213_s21 = int_to_ptr.vmem [resolvable:$true] %s212_s21 }
 0x183   : > { %s300_s22 = scalar_lea.vmem %s213_s21, 16  ;;  %s306_s23 = scalar_lea.vmem %s213_s21, 32 }
 0x184   : > { %p301_p7 = scmp.ne.s32.totalorder %s213_s21, %s300_s22  ;;  %p307_p10 = scmp.lt.s32.totalorder %s213_s21, %s213_s21 }
 0x185   : > { %p308_p11 = scmp.lt.s32.totalorder %s306_s23, %s300_s22 }
 0x186   : > { %p302_p8 = pnand %p301_p7, %p280_p6 }
 0x187   : > { %p309_p12 = por %p308_p11, %p307_p10 }
 0x188   : > { %p303_p9 = pneg %p302_p8 }
 0x18a   : > { %p310_p13 = pnand %p309_p12, %p303_p9 }
 0x18c   : > { %313 = shalt.err (!%p310_p13)
}
 0x18d   : > { %s314_s26 = scalar_lea.hbm %s408_s2, 16 }
 0x18e   : > { %p315_p0 = scmp.ne.s32.totalorder %s408_s2, %s314_s26  ;;  %p320_p3 = scmp.lt.u32.totalorder %s314_s26, %s408_s2 }
 0x190   : > { %p316_p1 = pnand %p315_p0, %p280_p6 }
 0x192   : > { %p317_p2 = pneg %p316_p1 }
 0x194   : > { %p322_p4 = pnand %p320_p3, %p317_p2 }
 0x196   : > { %325 = shalt.err (!%p322_p4)
}
 0x197   : > { %277 = dma.vmem_to_hbm [thread:$0]  (%p280_p6), %s213_s21, 16, %s408_s2, [#allocation4]  }
 0x198   : > { %331 = dma.done.wait (%p280_p6), [#allocation4], 16  }
 0x199   : > { %333 = vsyncadd (%p280_p6), [#allocation4], 4294967280 }
 0x19a PF: > { %s13_s9 = sadd.s32 1, %s336_s9  }
 0x19b   : > { %p10_p5 = scmp.ge.s32.totalorder %s13_s9, 6  }
 0x19d   :  { %12 = sbr.rel (!%p10_p5) target bundleno = 1 (0x1), region = 66 }
 0x1a4   :  { %225 = vsyncpa [#allocation4], 1 }
 0x1a5   :  { %227 = vsyncpa [#allocation4 + $0x1], 1 }

</bundles_post_ra>
